<compile_context>
chip_gen: v7x
topology: tpu7x:2x2x1
jax: 0.10.0
libtpu: 0.0.40
codegen_flags: <defaults>
</compile_context>

<pallas_src>
import functools

import jax
import jax.numpy as jnp
from jax import lax
from jax.experimental import pallas as pl
from jax.experimental.pallas import tpu as pltpu


def _smoothness_loss_kernel(x_ref, out_ref, *, k: int, w: int, w_pad: int):
    """Single-block kernel (whole problem fits comfortably in VMEM).

    x_ref   : (2, n_pad) float32 in VMEM -- row 0 = yHat, row 1 = y (zero padded)
    out_ref : (1, 1) float32 in VMEM (the scalar loss)
    """
    x = x_ref[...]                                               # (2, n_pad)

    # ---- extract the k shifted slices once, packed 4 shifts x 2 rows -------
    # blocks[c] has shape (2*s, w_pad): row 2i = yHat shift (4c+i), row 2i+1 = y.
    blocks = []
    for j0 in range(0, k, 4):
        s = min(4, k - j0)
        blk = jnp.concatenate(
            [x[:, j0 + j: j0 + j + w_pad] for j in range(s)], axis=0)   # (2s, w_pad)
        blocks.append((blk, s))

    def pair_reduce(blk, s):
        # (2s, w_pad) -> (2, w_pad): row 0 = sum over yHat shifts, row 1 = y.
        acc = blk[0:2]
        for i in range(1, s):
            acc = acc + blk[2 * i: 2 * i + 2]
        return acc

    # ---- window sums / means (reusing the very same shifted slices) --------
    wsum = pair_reduce(blocks[0][0], blocks[0][1])               # (2, w_pad)
    for blk, s in blocks[1:]:
        wsum = wsum + pair_reduce(blk, s)
    mean = wsum * (1.0 / k)                                      # (2, w_pad)

    # Hoisted replication of the per-window mean to each block's sublane shape.
    mean_rep = {}
    for _, s in blocks:
        if s not in mean_rep:
            mean_rep[s] = (jnp.concatenate([mean] * s, axis=0) if s > 1 else mean)

    # ---- accumulate sum_j |x[c+j] - mean[c]| --------------------------------
    acc2 = jnp.zeros((2, w_pad), jnp.float32)
    for blk, s in blocks:
        acc2 = acc2 + pair_reduce(jnp.abs(blk - mean_rep[s]), s)

    # ---- masked MSE over the true w windows ---------------------------------
    diff = acc2[0:1, :] - acc2[1:2, :]                           # (1, w_pad)
    lane = lax.broadcasted_iota(jnp.int32, (1, w_pad), 1)
    diff = jnp.where(lane < w, diff, 0.0)                        # mask padded windows
    mse = jnp.sum(diff * diff) * (1.0 / w)                       # divide by true w
    out_ref[...] = mse.reshape(1, 1)


def smoothness_loss(y_hat: jax.Array, y: jax.Array, k: int) -> jax.Array:
    """Pallas implementation of SmoothnessLoss.forward(yHat, y, k)."""
    assert y_hat.ndim == 1 and y.ndim == 1 and y_hat.shape == y.shape
    assert k >= 1
    n = y_hat.shape[0]
    w = n - k - 1
    assert w >= 1, "need at least one window"

    w_pad = ((w + 127) // 128) * 128          # lane-dense window axis
    n_pad = w_pad + k                         # covers every shifted slice j in [0, k)

    # Shared operand: row 0 = yHat, row 1 = y  -> every lane-shift is shared.
    x = jnp.stack([y_hat.astype(jnp.float32), y.astype(jnp.float32)], axis=0)  # (2, n)
    if n_pad > n:
        x = jnp.pad(x, ((0, 0), (0, n_pad - n)))
    else:
        # n_pad >= n - 1 always; the (at most one) dropped trailing element is
        # never touched by any window of the reference loop.
        x = x[:, :n_pad]

    kernel = functools.partial(_smoothness_loss_kernel, k=k, w=w, w_pad=w_pad)

    # Explicit VMEM budget: double-buffered input + a handful of vreg-sized
    # intermediates + slack; capped well below v7x's 64 MiB physical VMEM.
    est = 4 * (2 * 2 * n_pad + 32 * w_pad)
    vmem_limit = int(min(max(4 * est + (1 << 20), 2 << 20), 48 << 20))

    out = pl.pallas_call(
        kernel,
        out_shape=jax.ShapeDtypeStruct((1, 1), jnp.float32),
        in_specs=[pl.BlockSpec(memory_space=pltpu.MemorySpace.VMEM)],
        out_specs=pl.BlockSpec(memory_space=pltpu.MemorySpace.VMEM),
        compiler_params=pltpu.CompilerParams(vmem_limit_bytes=vmem_limit),
    )(x)
    return out[0, 0]


def _smoothness_loss_ref(y_hat, y, k):
    """Pure-JAX reference mirroring the PyTorch code."""
    n = y_hat.shape[0]
    w = n - k - 1

    def smooth(x):
        def one(i):
            km = lax.dynamic_slice(x, (i,), (k,))
            return jnp.sum(jnp.abs(km - jnp.mean(km)))
        return jnp.stack([one(i) for i in range(w)])

    d = smooth(y_hat.astype(jnp.float32)) - smooth(y.astype(jnp.float32))
    return jnp.mean(d * d)


if __name__ == "__main__":
    key = jax.random.PRNGKey(0)
    k1, k2 = jax.random.split(key)

    N = 64   # sequence length
    K = 8    # smoothness window size

    y_hat = jax.random.normal(k1, (N,), dtype=jnp.float32)
    y = jax.random.normal(k2, (N,), dtype=jnp.float32)

    loss = smoothness_loss(y_hat, y, K)
    loss = jax.block_until_ready(loss)

    ref = jax.block_until_ready(_smoothness_loss_ref(y_hat, y, K))
    assert jnp.allclose(loss, ref, rtol=1e-5, atol=1e-5), (loss, ref)

    print("KERNEL_OK")
</pallas_src>

<mosaic_0001>
module attributes {stable_mosaic.version = 11 : i64} {
  func.func @_smoothness_loss_kernel(%arg0: memref<2x136xf32, #tpu.memory_space<vmem>>, %arg1: memref<1x1xf32, #tpu.memory_space<vmem>>) attributes {dimension_semantics = [], scalar_prefetch = 0 : i64, scratch_operands = 0 : i64, tpu.core_type = #tpu.core_type<tc>} {
    %c0 = arith.constant 0 : index
    %c0_0 = arith.constant 0 : index
    %0 = vector.load %arg0[%c0, %c0_0] : memref<2x136xf32, #tpu.memory_space<vmem>>, vector<2x136xf32>
    %1 = vector.extract_strided_slice %0 {offsets = [0, 0], sizes = [2, 128], strides = [1, 1]} : vector<2x136xf32> to vector<2x128xf32>
    %2 = vector.extract_strided_slice %0 {offsets = [0, 1], sizes = [2, 128], strides = [1, 1]} : vector<2x136xf32> to vector<2x128xf32>
    %3 = vector.extract_strided_slice %0 {offsets = [0, 2], sizes = [2, 128], strides = [1, 1]} : vector<2x136xf32> to vector<2x128xf32>
    %4 = vector.extract_strided_slice %0 {offsets = [0, 3], sizes = [2, 128], strides = [1, 1]} : vector<2x136xf32> to vector<2x128xf32>
    %5 = tpu.concatenate %1, %2, %3, %4 in 0 : vector<2x128xf32>, vector<2x128xf32>, vector<2x128xf32>, vector<2x128xf32> -> vector<8x128xf32>
    %6 = vector.extract_strided_slice %0 {offsets = [0, 4], sizes = [2, 128], strides = [1, 1]} : vector<2x136xf32> to vector<2x128xf32>
    %7 = vector.extract_strided_slice %0 {offsets = [0, 5], sizes = [2, 128], strides = [1, 1]} : vector<2x136xf32> to vector<2x128xf32>
    %8 = vector.extract_strided_slice %0 {offsets = [0, 6], sizes = [2, 128], strides = [1, 1]} : vector<2x136xf32> to vector<2x128xf32>
    %9 = vector.extract_strided_slice %0 {offsets = [0, 7], sizes = [2, 128], strides = [1, 1]} : vector<2x136xf32> to vector<2x128xf32>
    %10 = tpu.concatenate %6, %7, %8, %9 in 0 : vector<2x128xf32>, vector<2x128xf32>, vector<2x128xf32>, vector<2x128xf32> -> vector<8x128xf32>
    %11 = vector.extract_strided_slice %5 {offsets = [0, 0], sizes = [2, 128], strides = [1, 1]} : vector<8x128xf32> to vector<2x128xf32>
    %12 = vector.extract_strided_slice %5 {offsets = [2, 0], sizes = [2, 128], strides = [1, 1]} : vector<8x128xf32> to vector<2x128xf32>
    %13 = arith.addf %11, %12 : vector<2x128xf32>
    %14 = vector.extract_strided_slice %5 {offsets = [4, 0], sizes = [2, 128], strides = [1, 1]} : vector<8x128xf32> to vector<2x128xf32>
    %15 = arith.addf %13, %14 : vector<2x128xf32>
    %16 = vector.extract_strided_slice %5 {offsets = [6, 0], sizes = [2, 128], strides = [1, 1]} : vector<8x128xf32> to vector<2x128xf32>
    %17 = arith.addf %15, %16 : vector<2x128xf32>
    %18 = vector.extract_strided_slice %10 {offsets = [0, 0], sizes = [2, 128], strides = [1, 1]} : vector<8x128xf32> to vector<2x128xf32>
    %19 = vector.extract_strided_slice %10 {offsets = [2, 0], sizes = [2, 128], strides = [1, 1]} : vector<8x128xf32> to vector<2x128xf32>
    %20 = arith.addf %18, %19 : vector<2x128xf32>
    %21 = vector.extract_strided_slice %10 {offsets = [4, 0], sizes = [2, 128], strides = [1, 1]} : vector<8x128xf32> to vector<2x128xf32>
    %22 = arith.addf %20, %21 : vector<2x128xf32>
    %23 = vector.extract_strided_slice %10 {offsets = [6, 0], sizes = [2, 128], strides = [1, 1]} : vector<8x128xf32> to vector<2x128xf32>
    %24 = arith.addf %22, %23 : vector<2x128xf32>
    %25 = arith.addf %17, %24 : vector<2x128xf32>
    %cst = arith.constant 1.250000e-01 : f32
    %26 = vector.broadcast %cst : f32 to vector<2x128xf32>
    %27 = arith.mulf %25, %26 : vector<2x128xf32>
    %28 = tpu.concatenate %27, %27, %27, %27 in 0 : vector<2x128xf32>, vector<2x128xf32>, vector<2x128xf32>, vector<2x128xf32> -> vector<8x128xf32>
    %cst_1 = arith.constant 0.000000e+00 : f32
    %29 = vector.broadcast %cst_1 : f32 to vector<2x128xf32>
    %30 = arith.subf %5, %28 : vector<8x128xf32>
    %31 = math.absf %30 : vector<8x128xf32>
    %32 = vector.extract_strided_slice %31 {offsets = [0, 0], sizes = [2, 128], strides = [1, 1]} : vector<8x128xf32> to vector<2x128xf32>
    %33 = vector.extract_strided_slice %31 {offsets = [2, 0], sizes = [2, 128], strides = [1, 1]} : vector<8x128xf32> to vector<2x128xf32>
    %34 = arith.addf %32, %33 : vector<2x128xf32>
    %35 = vector.extract_strided_slice %31 {offsets = [4, 0], sizes = [2, 128], strides = [1, 1]} : vector<8x128xf32> to vector<2x128xf32>
    %36 = arith.addf %34, %35 : vector<2x128xf32>
    %37 = vector.extract_strided_slice %31 {offsets = [6, 0], sizes = [2, 128], strides = [1, 1]} : vector<8x128xf32> to vector<2x128xf32>
    %38 = arith.addf %36, %37 : vector<2x128xf32>
    %39 = arith.addf %29, %38 : vector<2x128xf32>
    %40 = arith.subf %10, %28 : vector<8x128xf32>
    %41 = math.absf %40 : vector<8x128xf32>
    %42 = vector.extract_strided_slice %41 {offsets = [0, 0], sizes = [2, 128], strides = [1, 1]} : vector<8x128xf32> to vector<2x128xf32>
    %43 = vector.extract_strided_slice %41 {offsets = [2, 0], sizes = [2, 128], strides = [1, 1]} : vector<8x128xf32> to vector<2x128xf32>
    %44 = arith.addf %42, %43 : vector<2x128xf32>
    %45 = vector.extract_strided_slice %41 {offsets = [4, 0], sizes = [2, 128], strides = [1, 1]} : vector<8x128xf32> to vector<2x128xf32>
    %46 = arith.addf %44, %45 : vector<2x128xf32>
    %47 = vector.extract_strided_slice %41 {offsets = [6, 0], sizes = [2, 128], strides = [1, 1]} : vector<8x128xf32> to vector<2x128xf32>
    %48 = arith.addf %46, %47 : vector<2x128xf32>
    %49 = arith.addf %39, %48 : vector<2x128xf32>
    %50 = vector.extract_strided_slice %49 {offsets = [0, 0], sizes = [1, 128], strides = [1, 1]} : vector<2x128xf32> to vector<1x128xf32>
    %51 = vector.extract_strided_slice %49 {offsets = [1, 0], sizes = [1, 128], strides = [1, 1]} : vector<2x128xf32> to vector<1x128xf32>
    %52 = arith.subf %50, %51 : vector<1x128xf32>
    %53 = tpu.iota {dimensions = array<i32: 1>} : vector<1x128xi32>
    %c55_i32 = arith.constant 55 : i32
    %54 = vector.broadcast %c55_i32 : i32 to vector<1x128xi32>
    %55 = arith.cmpi slt, %53, %54 : vector<1x128xi32>
    %cst_2 = arith.constant 0.000000e+00 : f32
    %56 = vector.broadcast %cst_2 : f32 to vector<1x128xf32>
    %57 = arith.select %55, %52, %56 : vector<1x128xi1>, vector<1x128xf32>
    %58 = arith.mulf %57, %57 : vector<1x128xf32>
    %59 = vector.shape_cast %58 : vector<1x128xf32> to vector<1x1x128xf32>
    %cst_3 = arith.constant dense<0.000000e+00> : vector<1xf32>
    %60 = vector.multi_reduction <add>, %59, %cst_3 [1, 2] : vector<1x1x128xf32> to vector<1xf32>
    %61 = vector.shape_cast %60 : vector<1xf32> to vector<1x1x1xf32>
    %62 = vector.extract %61[0, 0, 0] : f32 from vector<1x1x1xf32>
    %cst_4 = arith.constant 0.0181818176 : f32
    %63 = arith.mulf %62, %cst_4 : f32
    %64 = vector.broadcast %63 : f32 to vector<1x1xf32>
    %c0_5 = arith.constant 0 : index
    %c0_6 = arith.constant 0 : index
    %65 = vector.load %arg1[%c0_5, %c0_6] : memref<1x1xf32, #tpu.memory_space<vmem>>, vector<1x1xf32>
    tpu.vector_store %arg1[%c0_5, %c0_6], %64 {strides = array<i32>} : memref<1x1xf32, #tpu.memory_space<vmem>>, vector<1x1xf32>,
    return
  }
}

</mosaic_0001>

<bundles_post_ra>
// kernel: tpu_custom_call.1
= control target key start
LH: loop header
LB: loop body
LE: loop exit
PB: predicated region body
PF: predicated region fallthrough
CT: control target
= control target key end

     0   :  { %6 = vsyncpa [#allocation3], 0  ;;  %s341_s0 = inlined_call_operand.hbm [shape: f32[2,136], index: 0, kind: input, shape index: {}]   ;;  %s342_s1 = inlined_call_operand.hbm [shape: f32[1,1], index: 1, kind: output, shape index: {}]  }
   0x1   :  { %7 = vsyncpa [#allocation4], 0  ;;  %s279_s6 = smov [#allocation2]   ;;  %s231_s10 = scalar_lea.hbm %s341_s0, 64 }
   0x2   :  { %s14_s7 = sshll.u32 %s279_s6, 4  ;;  %p232_p0 = scmp.ne.s32.totalorder %s341_s0, %s231_s10  ;;  %s15_s7 = int_to_ptr.vmem [resolvable:$true] %s14_s7 }
   0x3   :  { %p235_p1 = scmp.lt.u32.totalorder %s231_s10, %s341_s0 }
   0x5   :  { %p237_p2 = pnand %p235_p1, %p232_p0 }
   0x7   :  { %240 = shalt.err (!%p237_p2)
}
   0x8   :  { %s241_s15 = scalar_lea.vmem %s15_s7, 64  ;;  %p246_p4 = scmp.lt.s32.totalorder %s15_s7, %s15_s7 }
   0x9   :  { %p242_p3 = scmp.ne.s32.totalorder %s15_s7, %s241_s15  ;;  %p247_p5 = scmp.lt.s32.totalorder %s241_s15, %s241_s15 }
   0xb   :  { %p248_p6 = por %p247_p5, %p246_p4 }
   0xd   :  { %p249_p7 = pnand %p248_p6, %p242_p3 }
   0xf   :  { %252 = shalt.err (!%p249_p7)
}
  0x10   :  { %17 = dma.hbm_to_vmem [thread:$0]  %s341_s0, 64, %s15_s7, [#allocation3]  }
  0x11   :  { %275 = dma.done.wait [#allocation3], 64  }
  0x12   :  { %276 = vsyncadd [#allocation3], 4294967232  ;;  %v27_v0 = vlaneseq  ;;  %v280_v1 = vmov 1983009808   ;;  %v21_v6 = vld [vmem:[#allocation2] sm:$0xf] }
  0x13   :  { %v25_v2 = vunpack.c.l.s4 %v280_v1  ;;  %v23_v8 = vcombine.low %v21_v6, %v21_v6  ;;  %s281_s18 = smov 126   ;;  %s282_s19 = smov 127   ;;  %vm43_vm0 = vcmask 1039360   ;;  %vm62_vm1 = vcmask 1041408  }
  0x14   :  { %v28_v3 = vshrl.u32 %v27_v0, 7  ;;  %s283_s0 = smov 125   ;;  %vm51_vm2 = vcmask 1031168   ;;  %vm64_vm3 = vcmask 1043456   ;;  %vm66_vm4 = vcmask 1045504   ;;  %s284_s20 = smov 124  }
  0x15   :  { %v26_v4 = vunpack.c.0.s8 %v25_v2  ;;  %vm59_vm5 = vcmask 1022976   ;;  %vm116_vm6 = vcmask 1014784   ;;  %s285_s21 = smov 4   ;;  %vm190_vm8 = vcmask 1040384   ;;  %s286_s22 = smov [#allocation5]  }
  0x16   :  { %s211_s23 = sshll.u32 %s286_s22, 4  ;;  %vm203_vm9 = vcmask 0   ;;  %s212_s23 = int_to_ptr.vmem [resolvable:$true] %s211_s23 }
  0x17   :  { %v29_v5 = vsub.s32 %v26_v4, %v28_v3  ;;  %s253_s26 = scalar_lea.vmem %s212_s23, 16  ;;  %s257_s27 = scalar_lea.vmem %s212_s23, 32 }
  0x18   :  { %p254_p8 = scmp.ne.s32.totalorder %s212_s23, %s253_s26  ;;  %p258_p9 = scmp.lt.s32.totalorder %s212_s23, %s212_s23 }
  0x19   :  { %v37_v7 = vrot.slane %v21_v6, %v29_v5  ;;  %v30_v9 = vrot.slane %v23_v8, %v29_v5  ;;  %p259_p10 = scmp.lt.s32.totalorder %s257_s27, %s253_s26 }
  0x1b   :  { %49 = vrot.lane.b32.xlu1 %v37_v7, %s281_s18  ;;  %v46_v10 = vcombine.low %v37_v7, %v37_v7  ;;  %39 = vrot.lane.b32.xlu0 %v30_v9, %s282_s19  ;;  %v38_v11 = vcombine.high %v30_v9, %v30_v9  ;;  %v54_v12 = vcombine.low %v30_v9, %v30_v9  ;;  %p260_p11 = por %p259_p10, %p258_p9 }
  0x1c   :  { %v68_v15 = vcombine.high %v37_v7, %v37_v7 }
  0x1d   :  { %p261_p12 = pnand %p260_p11, %p254_p8 }
  0x1f   :  { %47 = vrot.lane.b32.xlu1 %v46_v10, %s281_s18  ;;  %41 = vrot.lane.b32.xlu0 %v38_v11, %s282_s19 }
  0x23   :  { %57 = vrot.lane.b32.xlu1 %v30_v9, %s283_s0  ;;  %55 = vrot.lane.b32.xlu0 %v54_v12, %s283_s0 }
  0x8d   :  { %v50_v13 = vpop.permute.xlu1 %49  ;;  %v40_v14 = vpop.permute.xlu0 %39 }
  0x91   :  { %v48_v16 = vpop.permute.xlu1 %47  ;;  %v42_v17 = vpop.permute.xlu0 %41 }
  0x92   :  { %v44_v18 = vsel %vm43_vm0, %v40_v14, %v42_v17  ;;  %v75_v19 = vsel %vm62_vm1, %v68_v15, %v42_v17  ;;  %v52_v20 = vsel %vm51_vm2, %v48_v16, %v50_v13 }
  0x93   :  { %v63_v21 = vsel %vm62_vm1, %v21_v6, %v44_v18  ;;  %v74_v22 = vsel %vm62_vm1, %v37_v7, %v44_v18  ;;  %v77_v24 = vsel %vm64_vm3, %v75_v19, %v50_v13 }
  0x94   :  { %v65_v26 = vsel %vm64_vm3, %v63_v21, %v52_v20  ;;  %v76_v29 = vsel %vm64_vm3, %v74_v22, %v52_v20 }
  0x95   :  { %v58_v23 = vpop.permute.xlu1 %57  ;;  %v56_v28 = vpop.permute.xlu0 %55 }
  0x96   :  { %v79_v25 = vsel %vm66_vm4, %v77_v24, %v58_v23  ;;  %v60_v30 = vsel %vm59_vm5, %v56_v28, %v58_v23 }
  0x97   :  { %v93_v27 = vrot.slane %v79_v25, 2  ;;  %v67_v31 = vsel %vm66_vm4, %v65_v26, %v60_v30  ;;  %v78_v32 = vsel %vm66_vm4, %v76_v29, %v60_v30  ;;  %v99_v34 = vrot.slane %v79_v25, 4 }
  0x98   :  { %v92_v35 = vrot.slane %v78_v32, 2  ;;  %v105_v37 = vrot.slane %v79_v25, 6  ;;  %v98_v39 = vrot.slane %v78_v32, 4  ;;  %v104_v42 = vrot.slane %v78_v32, 6 }
  0x99   :  { %v97_v33 = vadd.f32 %v93_v27, %v79_v25  ;;  %v81_v44 = vrot.slane %v67_v31, 2  ;;  %v84_v46 = vrot.slane %v67_v31, 4  ;;  %v87_v48 = vrot.slane %v67_v31, 6 }
  0x9a   :  { %v96_v38 = vadd.f32 %v92_v35, %v78_v32  ;;  %v186_v26 = vand.u32 127, %v27_v0 }
  0x9b   :  { %v103_v36 = vadd.f32 %v99_v34, %v97_v33  ;;  %v83_v45 = vadd.f32 %v81_v44, %v67_v31 }
  0x9c   :  { %v102_v41 = vadd.f32 %v98_v39, %v96_v38  ;;  %vm187_vm7 = vcmp.lt.s32.totalorder %v186_v26, 55 }
  0x9d   :  { %v109_v40 = vadd.f32 %v105_v37, %v103_v36  ;;  %v86_v47 = vadd.f32 %v84_v46, %v83_v45 }
  0x9e   :  { %v108_v43 = vadd.f32 %v104_v42, %v102_v41 }
  0x9f   :  { %114 = vrot.lane.b32.xlu1 %v109_v40, %s284_s20  ;;  %v89_v51 = vadd.f32 %v87_v48, %v86_v47 }
  0xa0   :  { %112 = vrot.lane.b32.xlu0 %v108_v43, %s284_s20 }
 0x111   :  { %v115_v49 = vpop.permute.xlu1 %114 }
 0x112   :  { %v113_v50 = vpop.permute.xlu0 %112 }
 0x113   :  { %v117_v52 = vsel %vm116_vm6, %v113_v50, %v115_v49 }
 0x114   :  { %v119_v53 = vadd.f32 %v117_v52, %v89_v51 }
 0x116   :  { %v120_v54 = vmul.f32 0.125, %v119_v53 }
 0x118   :  { %v122_v55 = vrot.slane %v120_v54, 6  ;;  %v124_v56 = vrot.slane %v120_v54, 4  ;;  %v126_v57 = vrot.slane %v120_v54, 2 }
 0x11a   :  { %v128_v58 = vsel %vm62_vm1, %v120_v54, %v122_v55 }
 0x11b   :  { %v129_v59 = vsel %vm64_vm3, %v128_v58, %v124_v56 }
 0x11c   :  { %v130_v60 = vsel %vm66_vm4, %v129_v59, %v126_v57 }
 0x11d   :  { %145 = vrot.lane.b32.xlu0 %v130_v60, %s285_s21  ;;  %v131_v15 = vsub.f32 %v67_v31, %v130_v60 }
 0x11f   :  { %v132_v16 = vand.u32 2147483647, %v131_v15 }
 0x121   :  { %v134_v17 = vrot.slane %v132_v16, 2  ;;  %v137_v19 = vrot.slane %v132_v16, 4  ;;  %v140_v21 = vrot.slane %v132_v16, 6 }
 0x123   :  { %v136_v18 = vadd.f32 %v134_v17, %v132_v16 }
 0x125   :  { %v139_v20 = vadd.f32 %v137_v19, %v136_v18 }
 0x127   :  { %v142_v24 = vadd.f32 %v140_v21, %v139_v20 }
 0x18f   :  { %v146_v61 = vpop.permute.xlu0 %145 }
 0x190   :  { %v148_v62 = vsub.f32 %v78_v32, %v146_v61  ;;  %v149_v63 = vsub.f32 %v79_v25, %v146_v61 }
 0x192   :  { %v150_v1 = vand.u32 2147483647, %v148_v62  ;;  %v151_v2 = vand.u32 2147483647, %v149_v63 }
 0x194   :  { %v155_v3 = vrot.slane %v151_v2, 2  ;;  %v154_v4 = vrot.slane %v150_v1, 2  ;;  %v161_v6 = vrot.slane %v151_v2, 4  ;;  %v160_v8 = vrot.slane %v150_v1, 4 }
 0x195   :  { %v167_v10 = vrot.slane %v151_v2, 6  ;;  %v166_v12 = vrot.slane %v150_v1, 6 }
 0x196   :  { %v159_v5 = vadd.f32 %v155_v3, %v151_v2  ;;  %v158_v7 = vadd.f32 %v154_v4, %v150_v1 }
 0x198   :  { %v165_v9 = vadd.f32 %v161_v6, %v159_v5  ;;  %v164_v11 = vadd.f32 %v160_v8, %v158_v7 }
 0x19a   :  { %v171_v13 = vadd.f32 %v167_v10, %v165_v9  ;;  %v170_v14 = vadd.f32 %v166_v12, %v164_v11 }
 0x19c   :  { %176 = vrot.lane.b32.xlu0 %v171_v13, %s284_s20  ;;  %174 = vrot.lane.b32.xlu1 %v170_v14, %s284_s20 }
 0x20e   :  { %v177_v22 = vpop.permute.xlu0 %176  ;;  %v175_v23 = vpop.permute.xlu1 %174 }
 0x20f   :  { %v178_v25 = vsel %vm116_vm6, %v175_v23, %v177_v22 }
 0x210   :  { %v180_v27 = vadd.f32 %v178_v25, %v142_v24 }
 0x212   :  { %v182_v28 = vrot.slane %v180_v27, 1 }
 0x214   :  { %v184_v29 = vsub.f32 %v180_v27, %v182_v28 }
 0x216   :  { %v188_v30 = vsel %vm187_vm7, %v184_v29, 0.0 }
 0x217   :  { %v189_v31 = vmul.f32 %v188_v30, %v188_v30 }
 0x219   :  { %v191_v32 = vsel %vm190_vm8, %v189_v31, 0.0 }
 0x21a   :  { %192 = vadd.xlane.f32.xlu1 %v191_v32 }
 0x2a7   :  { %v193_v33 = vpop.xlane.xlu1 %192 }
 0x2a8   :  { %v194_v34 = vrot.slane %v193_v33, 4 }
 0x2aa   :  { %v195_v35 = vadd.f32 %v194_v34, %v193_v33 }
 0x2ac   :  { %v196_v36 = vrot.slane %v195_v35, 2 }
 0x2ae   :  { %v197_v37 = vadd.f32 %v196_v36, %v195_v35 }
 0x2b0   :  { %v198_v38 = vrot.slane %v197_v37, 1 }
 0x2b2   :  { %v199_v39 = vadd.f32 %v198_v38, %v197_v37 }
 0x2b4   :  { %220 = vpush %v199_v39 }
 0x2e5   :  { %s221_s24 = spop %220 }
 0x2e6   :  { %s201_s25 = smul.f32 0.018181818, %s221_s24 }
 0x2e8   :  { %v202_v0 = vstv %s201_s25 }
 0x2e9   :  { %204 = vst.msk [vmem:[#allocation5] sm:$0x1] %vm203_vm9, %v202_v0 }
 0x2ea   :  { %264 = shalt.err (!%p261_p12)
}
 0x2eb   :  { %s265_s30 = scalar_lea.hbm %s342_s1, 16 }
 0x2ec   :  { %p266_p13 = scmp.ne.s32.totalorder %s342_s1, %s265_s30  ;;  %p269_p0 = scmp.lt.u32.totalorder %s265_s30, %s342_s1 }
 0x2ee   :  { %p271_p1 = pnand %p269_p0, %p266_p13 }
 0x2f0   :  { %274 = shalt.err (!%p271_p1)
}
 0x2f1   :  { %214 = dma.vmem_to_hbm [thread:$0]  %s212_s23, 16, %s342_s1, [#allocation4]  }
 0x2f2   :  { %277 = dma.done.wait [#allocation4], 16  }
 0x2f3   :  { %278 = vsyncadd [#allocation4], 4294967280 }
 0x2f4   :  { %218 = vsyncpa [#allocation3], 1 }
 0x2f5   :  { %219 = vsyncpa [#allocation4], 1 }

</bundles_post_ra>
